<compile_context>
chip_gen: v7x
topology: tpu7x:2x2x1
jax: 0.10.0
libtpu: 0.0.40
codegen_flags: <defaults>
</compile_context>

<pallas_src>
from functools import partial

import jax
import jax.numpy as jnp
from jax.experimental import pallas as pl
from jax.experimental.pallas import tpu as pltpu


LANE = 128           # TPU lane width; gate blocks / outputs are padded to this
ROW_GRANULARITY = 16 # bf16 sublane packing -> keep row tiles a multiple of 16


def _round_up(x, m):
    return (x + m - 1) // m * m


# ----------------------------------------------------------------------------
# Kernel
# ----------------------------------------------------------------------------
def nrnn_agent_kernel(
    x_ref, h_ref,                 # (T, E) bf16, (T, Hp) f32
    w1_ref, b1_ref,               # (E, Hp) bf16, (1, Hp) f32
    wih_ref, whh_ref,             # (Hp, 3*Hp) bf16 each (gate order r, z, n)
    bg_ref, bhn_ref,              # (1, 3*Hp) f32 (b_ir+b_hr | b_iz+b_hz | b_in), (1, Hp) f32
    w2_ref, b2_ref,               # (Hp, Ap) bf16, (1, Ap) f32
    q_ref, hout_ref,              # (T, Ap) f32, (T, Hp) f32
):
    Hp = h_ref.shape[-1]

    x = x_ref[...]                # bf16
    h = h_ref[...]                # f32 recurrent state (kept in f32 for accuracy / aliasing)

    # fc1 + ReLU: bf16 MXU matmul with f32 accumulate, f32 VPU elementwise.
    x1 = jnp.dot(x, w1_ref[...], preferred_element_type=jnp.float32) + b1_ref[...]
    x1 = jnp.maximum(x1, 0.0)

    # Fused GRU gate matmuls: 2 MXU pushes instead of 6.
    gx = jnp.dot(x1.astype(wih_ref.dtype), wih_ref[...],
                 preferred_element_type=jnp.float32) + bg_ref[...]
    gh = jnp.dot(h.astype(whh_ref.dtype), whh_ref[...],
                 preferred_element_type=jnp.float32)

    # Lane-aligned gate slices (each gate block is exactly Hp = k*128 lanes wide).
    r = jax.nn.sigmoid(gx[:, 0 * Hp:1 * Hp] + gh[:, 0 * Hp:1 * Hp])
    z = jax.nn.sigmoid(gx[:, 1 * Hp:2 * Hp] + gh[:, 1 * Hp:2 * Hp])
    n = jnp.tanh(gx[:, 2 * Hp:3 * Hp] + r * (gh[:, 2 * Hp:3 * Hp] + bhn_ref[...]))
    h_new = (1.0 - z) * n + z * h

    # fc2
    q = jnp.dot(h_new.astype(w2_ref.dtype), w2_ref[...],
                preferred_element_type=jnp.float32) + b2_ref[...]

    q_ref[...] = q                # (T, Ap) full-lane store
    hout_ref[...] = h_new         # (T, Hp) full-lane store, aliased with h_ref's buffer


# ----------------------------------------------------------------------------
# Wrapper
# ----------------------------------------------------------------------------
@partial(jax.jit, static_argnames=("H", "A", "tile_n"))
def nrnn_agent_forward(inputs, hidden_state, weights, *, H, A, tile_n=256):
    """inputs: (b, a, E) f32; hidden_state: (b, a, H) f32; weights from pack_params().

    Returns (q, h_out) with shapes (b, a, A) and (b, a, H), matching the PyTorch module.
    tile_n: row tile (256 for v6e/v7x's 256-wide MXU, use 128 on v5e).
    """
    b, a, e = inputs.shape
    N = b * a
    Hp = weights["w1"].shape[1]
    Ap = weights["w2"].shape[1]

    tn = min(tile_n, _round_up(N, ROW_GRANULARITY))
    Npad = _round_up(N, tn)
    grid = (Npad // tn,)

    # bf16 activations into the MXU; hidden state stays f32 (aliased + accumulated in f32).
    x = jnp.pad(inputs.reshape(N, e).astype(jnp.bfloat16), ((0, Npad - N), (0, 0)))
    h = jnp.pad(hidden_state.reshape(N, H).astype(jnp.float32),
                ((0, Npad - N), (0, Hp - H)))

    def row_spec(cols):
        return pl.BlockSpec((tn, cols), lambda i: (i, 0))

    def full_spec(arr):
        # Whole-array block, constant index -> DMA'd once, stays VMEM-resident.
        return pl.BlockSpec(arr.shape, lambda i: (0, 0))

    w_args = (weights["w1"], weights["b1"], weights["wih"], weights["whh"],
              weights["bg"], weights["bhn"], weights["w2"], weights["b2"])

    q_pad, h_pad = pl.pallas_call(
        nrnn_agent_kernel,
        out_shape=(
            jax.ShapeDtypeStruct((Npad, Ap), jnp.float32),
            jax.ShapeDtypeStruct((Npad, Hp), jnp.float32),
        ),
        grid_spec=pltpu.PrefetchScalarGridSpec(
            num_scalar_prefetch=0,
            grid=grid,
            in_specs=[row_spec(e), row_spec(Hp)] + [full_spec(w) for w in w_args],
            out_specs=(row_spec(Ap), row_spec(Hp)),
        ),
        # Hidden state is updated in place (input 1 = h, output 1 = h_out).
        input_output_aliases={1: 1},
        compiler_params=pltpu.CompilerParams(
            dimension_semantics=("parallel",),   # shard row tiles across TCs on v7x
        ),
    )(x, h, *w_args)

    q = q_pad[:N, :A].reshape(b, a, A)
    h_out = h_pad[:N, :H].reshape(b, a, H)
    return q, h_out


# ----------------------------------------------------------------------------
# Parameter construction / packing
# ----------------------------------------------------------------------------
def init_params(key, input_shape, rnn_hidden_dim, n_actions):
    """Deterministic synthetic parameters matching the PyTorch module shapes
    (stored transposed: [in_features, out_features])."""
    keys = jax.random.split(key, 16)

    def u(k, shape, fan_in):
        bound = 1.0 / jnp.sqrt(jnp.float32(fan_in))
        return jax.random.uniform(k, shape, jnp.float32, -bound, bound)

    E, H, A = input_shape, rnn_hidden_dim, n_actions
    return {
        "w1": u(keys[0], (E, H), E), "b1": u(keys[1], (1, H), E),
        "w_ir": u(keys[2], (H, H), H), "w_iz": u(keys[3], (H, H), H), "w_in": u(keys[4], (H, H), H),
        "b_ir": u(keys[5], (1, H), H), "b_iz": u(keys[6], (1, H), H), "b_in": u(keys[7], (1, H), H),
        "w_hr": u(keys[8], (H, H), H), "w_hz": u(keys[9], (H, H), H), "w_hn": u(keys[10], (H, H), H),
        "b_hr": u(keys[11], (1, H), H), "b_hz": u(keys[12], (1, H), H), "b_hn": u(keys[13], (1, H), H),
        "w2": u(keys[14], (H, A), H), "b2": u(keys[15], (1, A), H),
    }


def pack_params(p):
    """Pad to 128-lane boundaries, fuse GRU gate weights/biases, cast MXU operands to bf16."""
    E, H = p["w1"].shape
    A = p["w2"].shape[1]
    Hp = _round_up(H, LANE)
    Ap = _round_up(A, LANE)

    def pad2(w, rows, cols):
        return jnp.pad(w, ((0, rows - w.shape[0]), (0, cols - w.shape[1])))

    w1 = pad2(p["w1"], E, Hp).astype(jnp.bfloat16)
    b1 = pad2(p["b1"], 1, Hp).astype(jnp.float32)

    # Fused gate weights, each gate block padded to Hp lanes (gate order r, z, n).
    wih = jnp.concatenate(
        [pad2(p["w_ir"], Hp, Hp), pad2(p["w_iz"], Hp, Hp), pad2(p["w_in"], Hp, Hp)],
        axis=1).astype(jnp.bfloat16)
    whh = jnp.concatenate(
        [pad2(p["w_hr"], Hp, Hp), pad2(p["w_hz"], Hp, Hp), pad2(p["w_hn"], Hp, Hp)],
        axis=1).astype(jnp.bfloat16)

    # Folded gate biases; b_hn must stay separate (inside r * (h @ W_hn + b_hn)).
    bg = jnp.concatenate(
        [pad2(p["b_ir"] + p["b_hr"], 1, Hp),
         pad2(p["b_iz"] + p["b_hz"], 1, Hp),
         pad2(p["b_in"], 1, Hp)], axis=1).astype(jnp.float32)
    bhn = pad2(p["b_hn"], 1, Hp).astype(jnp.float32)

    w2 = pad2(p["w2"], Hp, Ap).astype(jnp.bfloat16)
    b2 = pad2(p["b2"], 1, Ap).astype(jnp.float32)

    return {"w1": w1, "b1": b1, "wih": wih, "whh": whh,
            "bg": bg, "bhn": bhn, "w2": w2, "b2": b2}


# ----------------------------------------------------------------------------
# Pure-JAX f32 reference (PyTorch semantics)
# ----------------------------------------------------------------------------
def reference_forward(inputs, hidden_state, p):
    b, a, e = inputs.shape
    H = p["w1"].shape[1]
    x = inputs.reshape(-1, e)
    h = hidden_state.reshape(-1, H)
    x1 = jnp.maximum(x @ p["w1"] + p["b1"], 0.0)
    r = jax.nn.sigmoid(x1 @ p["w_ir"] + p["b_ir"] + h @ p["w_hr"] + p["b_hr"])
    z = jax.nn.sigmoid(x1 @ p["w_iz"] + p["b_iz"] + h @ p["w_hz"] + p["b_hz"])
    n = jnp.tanh(x1 @ p["w_in"] + p["b_in"] + r * (h @ p["w_hn"] + p["b_hn"]))
    h_new = (1.0 - z) * n + z * h
    q = h_new @ p["w2"] + p["b2"]
    return q.reshape(b, a, -1), h_new.reshape(b, a, -1)


if __name__ == "__main__":
    # Small shapes implied by the module: batch b=2, agents a=4, obs dim e=16,
    # rnn_hidden_dim=32, n_actions=8.
    b, a, e = 2, 4, 16
    rnn_hidden_dim, n_actions = 32, 8

    key = jax.random.PRNGKey(0)
    k_in, k_h, k_p = jax.random.split(key, 3)

    inputs = jax.random.normal(k_in, (b, a, e), jnp.float32)
    hidden_state = jax.random.normal(k_h, (b, a, rnn_hidden_dim), jnp.float32)

    raw_params = init_params(k_p, e, rnn_hidden_dim, n_actions)
    weights = pack_params(raw_params)

    q, h_out = nrnn_agent_forward(inputs, hidden_state, weights,
                                  H=rnn_hidden_dim, A=n_actions)
    q = jax.block_until_ready(q)
    h_out = jax.block_until_ready(h_out)

    # Sanity-check against the plain-JAX f32 reference (kernel uses bf16 MXU operands
    # with f32 accumulation, so allow a modest tolerance).
    q_ref, h_ref = reference_forward(inputs, hidden_state, raw_params)
    assert q.shape == (b, a, n_actions) and h_out.shape == (b, a, rnn_hidden_dim)
    assert jnp.allclose(q, q_ref, atol=3e-2, rtol=3e-2), "q mismatch"
    assert jnp.allclose(h_out, h_ref, atol=3e-2, rtol=3e-2), "h mismatch"

    print("KERNEL_OK")
</pallas_src>

<mosaic_0001>
module attributes {stable_mosaic.version = 11 : i64} {
  func.func @nrnn_agent_kernel(%arg0: i32, %arg1: memref<16x16xbf16, #tpu.memory_space<vmem>>, %arg2: memref<16x128xf32, #tpu.memory_space<vmem>>, %arg3: memref<16x128xbf16, #tpu.memory_space<vmem>>, %arg4: memref<1x128xf32, #tpu.memory_space<vmem>>, %arg5: memref<128x384xbf16, #tpu.memory_space<vmem>>, %arg6: memref<128x384xbf16, #tpu.memory_space<vmem>>, %arg7: memref<1x384xf32, #tpu.memory_space<vmem>>, %arg8: memref<1x128xf32, #tpu.memory_space<vmem>>, %arg9: memref<128x128xbf16, #tpu.memory_space<vmem>>, %arg10: memref<1x128xf32, #tpu.memory_space<vmem>>, %arg11: memref<16x128xf32, #tpu.memory_space<vmem>>, %arg12: memref<16x128xf32, #tpu.memory_space<vmem>>) attributes {dimension_semantics = [#tpu.dimension_semantics<parallel>], iteration_bounds = array<i64: 1>, scalar_prefetch = 0 : i64, scratch_operands = 0 : i64, tpu.core_type = #tpu.core_type<tc>, window_params = [{transform_indices = @transform_0, window_bounds = array<i64: 16, 16>}, {transform_indices = @transform_1, window_bounds = array<i64: 16, 128>}, {pipeline_mode = #tpu.pipeline_mode<synchronous>, transform_indices = @transform_2, window_bounds = array<i64: 16, 128>}, {pipeline_mode = #tpu.pipeline_mode<synchronous>, transform_indices = @transform_3, window_bounds = array<i64: 1, 128>}, {pipeline_mode = #tpu.pipeline_mode<synchronous>, transform_indices = @transform_4, window_bounds = array<i64: 128, 384>}, {pipeline_mode = #tpu.pipeline_mode<synchronous>, transform_indices = @transform_5, window_bounds = array<i64: 128, 384>}, {pipeline_mode = #tpu.pipeline_mode<synchronous>, transform_indices = @transform_6, window_bounds = array<i64: 1, 384>}, {pipeline_mode = #tpu.pipeline_mode<synchronous>, transform_indices = @transform_7, window_bounds = array<i64: 1, 128>}, {pipeline_mode = #tpu.pipeline_mode<synchronous>, transform_indices = @transform_8, window_bounds = array<i64: 128, 128>}, {pipeline_mode = #tpu.pipeline_mode<synchronous>, transform_indices = @transform_9, window_bounds = array<i64: 1, 128>}, {transform_indices = @transform_10, window_bounds = array<i64: 16, 128>}, {transform_indices = @transform_11, window_bounds = array<i64: 16, 128>}]} {
    %c0 = arith.constant 0 : index
    %c0_0 = arith.constant 0 : index
    %0 = vector.load %arg1[%c0, %c0_0] : memref<16x16xbf16, #tpu.memory_space<vmem>>, vector<16x16xbf16>
    %c0_1 = arith.constant 0 : index
    %c0_2 = arith.constant 0 : index
    %1 = vector.load %arg2[%c0_1, %c0_2] : memref<16x128xf32, #tpu.memory_space<vmem>>, vector<16x128xf32>
    %c0_3 = arith.constant 0 : index
    %c0_4 = arith.constant 0 : index
    %2 = vector.load %arg3[%c0_3, %c0_4] : memref<16x128xbf16, #tpu.memory_space<vmem>>, vector<16x128xbf16>
    %cst = arith.constant dense<0.000000e+00> : vector<16x128xf32>
    %3 = tpu.matmul %0, %2, %cst {dimension_numbers = #tpu.dot_dimension_numbers<[1], [0], [0], [1], [0, 0, 1, 1], [], []>} : vector<16x16xbf16>, vector<16x128xbf16>, vector<16x128xf32> -> vector<16x128xf32>
    %c0_5 = arith.constant 0 : index
    %c0_6 = arith.constant 0 : index
    %4 = vector.load %arg4[%c0_5, %c0_6] : memref<1x128xf32, #tpu.memory_space<vmem>>, vector<1x128xf32>
    %5 = vector.broadcast %4 : vector<1x128xf32> to vector<16x128xf32>
    %6 = arith.addf %3, %5 : vector<16x128xf32>
    %cst_7 = arith.constant 0.000000e+00 : f32
    %7 = vector.broadcast %cst_7 : f32 to vector<16x128xf32>
    %8 = arith.maximumf %6, %7 : vector<16x128xf32>
    %9 = arith.truncf %8 : vector<16x128xf32> to vector<16x128xbf16>
    %c0_8 = arith.constant 0 : index
    %c0_9 = arith.constant 0 : index
    %10 = vector.load %arg5[%c0_8, %c0_9] : memref<128x384xbf16, #tpu.memory_space<vmem>>, vector<128x384xbf16>
    %cst_10 = arith.constant dense<0.000000e+00> : vector<16x384xf32>
    %11 = tpu.matmul %9, %10, %cst_10 {dimension_numbers = #tpu.dot_dimension_numbers<[1], [0], [0], [1], [0, 0, 1, 1], [], []>} : vector<16x128xbf16>, vector<128x384xbf16>, vector<16x384xf32> -> vector<16x384xf32>
    %c0_11 = arith.constant 0 : index
    %c0_12 = arith.constant 0 : index
    %12 = vector.load %arg7[%c0_11, %c0_12] : memref<1x384xf32, #tpu.memory_space<vmem>>, vector<1x384xf32>
    %13 = vector.broadcast %12 : vector<1x384xf32> to vector<16x384xf32>
    %14 = arith.addf %11, %13 : vector<16x384xf32>
    %15 = arith.truncf %1 : vector<16x128xf32> to vector<16x128xbf16>
    %c0_13 = arith.constant 0 : index
    %c0_14 = arith.constant 0 : index
    %16 = vector.load %arg6[%c0_13, %c0_14] : memref<128x384xbf16, #tpu.memory_space<vmem>>, vector<128x384xbf16>
    %cst_15 = arith.constant dense<0.000000e+00> : vector<16x384xf32>
    %17 = tpu.matmul %15, %16, %cst_15 {dimension_numbers = #tpu.dot_dimension_numbers<[1], [0], [0], [1], [0, 0, 1, 1], [], []>} : vector<16x128xbf16>, vector<128x384xbf16>, vector<16x384xf32> -> vector<16x384xf32>
    %18 = vector.extract_strided_slice %14 {offsets = [0, 0], sizes = [16, 128], strides = [1, 1]} : vector<16x384xf32> to vector<16x128xf32>
    %19 = vector.extract_strided_slice %17 {offsets = [0, 0], sizes = [16, 128], strides = [1, 1]} : vector<16x384xf32> to vector<16x128xf32>
    %20 = arith.addf %18, %19 : vector<16x128xf32>
    %21 = arith.negf %20 : vector<16x128xf32>
    %22 = math.exp %21 : vector<16x128xf32>
    %cst_16 = arith.constant 1.000000e+00 : f32
    %23 = vector.broadcast %cst_16 : f32 to vector<16x128xf32>
    %24 = arith.addf %23, %22 : vector<16x128xf32>
    %25 = arith.divf %23, %24 : vector<16x128xf32>
    %26 = vector.extract_strided_slice %14 {offsets = [0, 128], sizes = [16, 128], strides = [1, 1]} : vector<16x384xf32> to vector<16x128xf32>
    %27 = vector.extract_strided_slice %17 {offsets = [0, 128], sizes = [16, 128], strides = [1, 1]} : vector<16x384xf32> to vector<16x128xf32>
    %28 = arith.addf %26, %27 : vector<16x128xf32>
    %29 = arith.negf %28 : vector<16x128xf32>
    %30 = math.exp %29 : vector<16x128xf32>
    %cst_17 = arith.constant 1.000000e+00 : f32
    %31 = vector.broadcast %cst_17 : f32 to vector<16x128xf32>
    %32 = arith.addf %31, %30 : vector<16x128xf32>
    %33 = arith.divf %31, %32 : vector<16x128xf32>
    %34 = vector.extract_strided_slice %14 {offsets = [0, 256], sizes = [16, 128], strides = [1, 1]} : vector<16x384xf32> to vector<16x128xf32>
    %35 = vector.extract_strided_slice %17 {offsets = [0, 256], sizes = [16, 128], strides = [1, 1]} : vector<16x384xf32> to vector<16x128xf32>
    %c0_18 = arith.constant 0 : index
    %c0_19 = arith.constant 0 : index
    %36 = vector.load %arg8[%c0_18, %c0_19] : memref<1x128xf32, #tpu.memory_space<vmem>>, vector<1x128xf32>
    %37 = vector.broadcast %36 : vector<1x128xf32> to vector<16x128xf32>
    %38 = arith.addf %35, %37 : vector<16x128xf32>
    %39 = arith.mulf %25, %38 : vector<16x128xf32>
    %40 = arith.addf %34, %39 : vector<16x128xf32>
    %41 = math.tanh %40 : vector<16x128xf32>
    %cst_20 = arith.constant 1.000000e+00 : f32
    %42 = vector.broadcast %cst_20 : f32 to vector<16x128xf32>
    %43 = arith.subf %42, %33 : vector<16x128xf32>
    %44 = arith.mulf %43, %41 : vector<16x128xf32>
    %45 = arith.mulf %33, %1 : vector<16x128xf32>
    %46 = arith.addf %44, %45 : vector<16x128xf32>
    %47 = arith.truncf %46 : vector<16x128xf32> to vector<16x128xbf16>
    %c0_21 = arith.constant 0 : index
    %c0_22 = arith.constant 0 : index
    %48 = vector.load %arg9[%c0_21, %c0_22] : memref<128x128xbf16, #tpu.memory_space<vmem>>, vector<128x128xbf16>
    %cst_23 = arith.constant dense<0.000000e+00> : vector<16x128xf32>
    %49 = tpu.matmul %47, %48, %cst_23 {dimension_numbers = #tpu.dot_dimension_numbers<[1], [0], [0], [1], [0, 0, 1, 1], [], []>} : vector<16x128xbf16>, vector<128x128xbf16>, vector<16x128xf32> -> vector<16x128xf32>
    %c0_24 = arith.constant 0 : index
    %c0_25 = arith.constant 0 : index
    %50 = vector.load %arg10[%c0_24, %c0_25] : memref<1x128xf32, #tpu.memory_space<vmem>>, vector<1x128xf32>
    %51 = vector.broadcast %50 : vector<1x128xf32> to vector<16x128xf32>
    %52 = arith.addf %49, %51 : vector<16x128xf32>
    %c0_26 = arith.constant 0 : index
    %c0_27 = arith.constant 0 : index
    %53 = vector.load %arg11[%c0_26, %c0_27] : memref<16x128xf32, #tpu.memory_space<vmem>>, vector<16x128xf32>
    tpu.vector_store %arg11[%c0_26, %c0_27], %52 {strides = array<i32>} : memref<16x128xf32, #tpu.memory_space<vmem>>, vector<16x128xf32>,
    %c0_28 = arith.constant 0 : index
    %c0_29 = arith.constant 0 : index
    %54 = vector.load %arg12[%c0_28, %c0_29] : memref<16x128xf32, #tpu.memory_space<vmem>>, vector<16x128xf32>
    tpu.vector_store %arg12[%c0_28, %c0_29], %46 {strides = array<i32>} : memref<16x128xf32, #tpu.memory_space<vmem>>, vector<16x128xf32>,
    return
  }
  func.func @transform_0(%arg0: i32) -> (i32, i32) {
    %c0_i32 = arith.constant 0 : i32
    %c0_i32_0 = arith.constant 0 : i32
    return %arg0, %c0_i32 : i32, i32
  }
  func.func @transform_1(%arg0: i32) -> (i32, i32) {
    %c0_i32 = arith.constant 0 : i32
    %c0_i32_0 = arith.constant 0 : i32
    return %arg0, %c0_i32 : i32, i32
  }
  func.func @transform_2(%arg0: i32) -> (i32, i32) {
    %c0_i32 = arith.constant 0 : i32
    %c0_i32_0 = arith.constant 0 : i32
    %c0_i32_1 = arith.constant 0 : i32
    return %c0_i32, %c0_i32_0 : i32, i32
  }
  func.func @transform_3(%arg0: i32) -> (i32, i32) {
    %c0_i32 = arith.constant 0 : i32
    %c0_i32_0 = arith.constant 0 : i32
    %c0_i32_1 = arith.constant 0 : i32
    return %c0_i32, %c0_i32_0 : i32, i32
  }
  func.func @transform_4(%arg0: i32) -> (i32, i32) {
    %c0_i32 = arith.constant 0 : i32
    %c0_i32_0 = arith.constant 0 : i32
    %c0_i32_1 = arith.constant 0 : i32
    return %c0_i32, %c0_i32_0 : i32, i32
  }
  func.func @transform_5(%arg0: i32) -> (i32, i32) {
    %c0_i32 = arith.constant 0 : i32
    %c0_i32_0 = arith.constant 0 : i32
    %c0_i32_1 = arith.constant 0 : i32
    return %c0_i32, %c0_i32_0 : i32, i32
  }
  func.func @transform_6(%arg0: i32) -> (i32, i32) {
    %c0_i32 = arith.constant 0 : i32
    %c0_i32_0 = arith.constant 0 : i32
    %c0_i32_1 = arith.constant 0 : i32
    return %c0_i32, %c0_i32_0 : i32, i32
  }
  func.func @transform_7(%arg0: i32) -> (i32, i32) {
    %c0_i32 = arith.constant 0 : i32
    %c0_i32_0 = arith.constant 0 : i32
    %c0_i32_1 = arith.constant 0 : i32
    return %c0_i32, %c0_i32_0 : i32, i32
  }
  func.func @transform_8(%arg0: i32) -> (i32, i32) {
    %c0_i32 = arith.constant 0 : i32
    %c0_i32_0 = arith.constant 0 : i32
    %c0_i32_1 = arith.constant 0 : i32
    return %c0_i32, %c0_i32_0 : i32, i32
  }
  func.func @transform_9(%arg0: i32) -> (i32, i32) {
    %c0_i32 = arith.constant 0 : i32
    %c0_i32_0 = arith.constant 0 : i32
    %c0_i32_1 = arith.constant 0 : i32
    return %c0_i32, %c0_i32_0 : i32, i32
  }
  func.func @transform_10(%arg0: i32) -> (i32, i32) {
    %c0_i32 = arith.constant 0 : i32
    %c0_i32_0 = arith.constant 0 : i32
    return %arg0, %c0_i32 : i32, i32
  }
  func.func @transform_11(%arg0: i32) -> (i32, i32) {
    %c0_i32 = arith.constant 0 : i32
    %c0_i32_0 = arith.constant 0 : i32
    return %arg0, %c0_i32 : i32, i32
  }
}

</mosaic_0001>

<bundles_post_ra>
// kernel: nrnn_agent_forward.1
= control target key start
LH: loop header
LB: loop body
LE: loop exit
PB: predicated region body
PF: predicated region fallthrough
CT: control target
= control target key end

     0   :  { %17 = vsyncpa [#allocation3], 0  ;;  %s1332_s0 = inlined_call_operand.vmem [shape: bf16[16,16], index: 0, kind: input, shape index: {}]   ;;  %s1333_s1 = inlined_call_operand.vmem [shape: f32[16,128], index: 1, kind: input, shape index: {}, may-alias: {1,11}]   ;;  %s1334_s2 = inlined_call_operand.vmem [shape: bf16[16,128], index: 2, kind: input, shape index: {}]   ;;  %s1335_s3 = inlined_call_operand.vmem [shape: f32[1,128], index: 3, kind: input, shape index: {}]   ;;  %s1336_s4 = inlined_call_operand.hbm [shape: bf16[128,384], index: 4, kind: input, shape index: {}]   ;;  %s1337_s5 = inlined_call_operand.hbm [shape: bf16[128,384], index: 5, kind: input, shape index: {}]   ;;  %s1338_s6 = inlined_call_operand.vmem [shape: f32[1,384], index: 6, kind: input, shape index: {}]   ;;  %s1339_s7 = inlined_call_operand.vmem [shape: f32[1,128], index: 7, kind: input, shape index: {}]   ;;  %s1340_s8 = inlined_call_operand.vmem [shape: bf16[128,128], index: 8, kind: input, shape index: {}]   ;;  %s1341_s9 = inlined_call_operand.vmem [shape: f32[1,128], index: 9, kind: input, shape index: {}]   ;;  %s1342_s10 = inlined_call_operand.vmem [shape: f32[16,128], index: 10, kind: output, shape index: {0}]   ;;  %s1343_s11 = inlined_call_operand.vmem [shape: f32[16,128], index: 11, kind: output, shape index: {1}, may-alias: {1,11}]  }
   0x1   :  { %18 = vsyncpa [#allocation5], 0  ;;  %s1140_s17 = smov [#allocation2]   ;;  %s1092_s21 = scalar_lea.hbm %s1336_s4, 3072 }
   0x2   :  { %s32_s18 = sshll.u32 %s1140_s17, 4  ;;  %p1093_p0 = scmp.ne.s32.totalorder %s1336_s4, %s1092_s21  ;;  %s33_s18 = int_to_ptr.vmem [resolvable:$true] %s32_s18 }
   0x3   :  { %p1096_p1 = scmp.lt.u32.totalorder %s1092_s21, %s1336_s4 }
   0x5   :  { %p1098_p2 = pnand %p1096_p1, %p1093_p0 }
   0x7   :  { %1101 = shalt.err (!%p1098_p2)
}
   0x8   :  { %s1102_s26 = scalar_lea.vmem %s33_s18, 3072  ;;  %p1107_p4 = scmp.lt.s32.totalorder %s33_s18, %s33_s18 }
   0x9   :  { %p1103_p3 = scmp.ne.s32.totalorder %s33_s18, %s1102_s26  ;;  %p1108_p5 = scmp.lt.s32.totalorder %s1102_s26, %s1102_s26 }
   0xb   :  { %p1109_p6 = por %p1108_p5, %p1107_p4 }
   0xd   :  { %p1110_p7 = pnand %p1109_p6, %p1103_p3 }
   0xf   :  { %1113 = shalt.err (!%p1110_p7)
}
  0x10   :  { %s1141_s27 = smov 192   ;;  %s1142_s28 = smov 12  }
  0x11   :  { %38 = dma.hbm_to_vmem [thread:$0]  %s1336_s4, 3072, %s33_s18, [#allocation3], %s1141_s27, %s1141_s27, %s1142_s28  }
  0x12   :  { %s1143_s12 = smov [#allocation4]   ;;  %s1114_s16 = scalar_lea.hbm %s1337_s5, 3072 }
  0x13   :  { %s44_s13 = sshll.u32 %s1143_s12, 4  ;;  %p1115_p8 = scmp.ne.s32.totalorder %s1337_s5, %s1114_s16  ;;  %s45_s13 = int_to_ptr.vmem [resolvable:$true] %s44_s13 }
  0x14   :  { %p1118_p9 = scmp.lt.u32.totalorder %s1114_s16, %s1337_s5 }
  0x16   :  { %p1120_p10 = pnand %p1118_p9, %p1115_p8 }
  0x18   :  { %1123 = shalt.err (!%p1120_p10)
}
  0x19   :  { %s1124_s22 = scalar_lea.vmem %s45_s13, 3072  ;;  %p1129_p12 = scmp.lt.s32.totalorder %s45_s13, %s45_s13 }
  0x1a   :  { %p1125_p11 = scmp.ne.s32.totalorder %s45_s13, %s1124_s22  ;;  %p1130_p13 = scmp.lt.s32.totalorder %s1124_s22, %s1124_s22 }
  0x1c   :  { %p1131_p0 = por %p1130_p13, %p1129_p12 }
  0x1e   :  { %p1132_p1 = pnand %p1131_p0, %p1125_p11 }
  0x20   :  { %1135 = shalt.err (!%p1132_p1)
}
  0x21   :  { %50 = dma.hbm_to_vmem [thread:$0]  %s1337_s5, 3072, %s45_s13, [#allocation5], %s1141_s27, %s1141_s27, %s1142_s28  }
  0x22   :  { %1136 = dma.done.wait [#allocation3], 3072  }
  0x23   :  { %1137 = vsyncadd [#allocation3], 4294964224 }
  0x24   :  { %1138 = dma.done.wait [#allocation5], 3072  }
  0x25   :  { %1139 = vsyncadd [#allocation5], 4294964224  ;;  %v1144_v0 = vmov 0.0   ;;  %vm1145_vm0 = vmmov 0   ;;  %v998_v1 = vld [vmem:[%s1334_s2] sm:$0xff]   ;;  %vm90_vm1 = vcmask 130048  }
  0x26   :  { %917 = vmatprep.subr.bf16.mxu0 %v1144_v0  ;;  %919 = vmatprep.mubr.msk.bf16.mxu0 %vm1145_vm0, %v1144_v0  ;;  %v999_v2 = vld [vmem:[%s1332_s0] sm:$0xff]   ;;  %v1003_v5 = vld [vmem:[#allocation2 + $0x8] ss:$12 sps:$4 sm:$0xff]   ;;  %v1010_v10 = vld [vmem:[#allocation2 + $0x30] ss:$12 sps:$4 sm:$0xff]   ;;  %v1146_v28 = vmov 0  }
  0x27   :  { %918 = vmatpush3.bf16.msra.mxu0 %v998_v1  ;;  %v1000_v3 = vld [vmem:[#allocation2 + $0x4] ss:$12 sps:$4 sm:$0xff]   ;;  %v1002_v4 = vld [vmem:[#allocation2] ss:$12 sps:$4 sm:$0xff]   ;;  %v1004_v6 = vld [vmem:[#allocation2 + $0x1c] ss:$12 sps:$4 sm:$0xff]   ;;  %347 = vmatprep.mubr.bf16.mxu1 %v1146_v28 }
  0x28   :  { %923 = vmatprep.subr.bf16.mxu0 %v1144_v0  ;;  %315 = vmatprep.subr.bf16.mxu1 %v1000_v3  ;;  %v1006_v7 = vld [vmem:[#allocation2 + $0x18] ss:$12 sps:$4 sm:$0xff]   ;;  %v1007_v8 = vld [vmem:[#allocation2 + $0x20] ss:$12 sps:$4 sm:$0xff]   ;;  %v1014_v13 = vld [vmem:[#allocation2 + $0x48] ss:$12 sps:$4 sm:$0xff]  }
  0x29   :  { %316 = vmatpush1.bf16.msra.mxu1 %v1002_v4  ;;  %v1008_v9 = vld [vmem:[#allocation2 + $0x34] ss:$12 sps:$4 sm:$0xff]   ;;  %v1011_v11 = vld [vmem:[#allocation2 + $0x38] ss:$12 sps:$4 sm:$0xff]   ;;  %v1015_v14 = vld [vmem:[#allocation2 + $0x50] ss:$12 sps:$4 sm:$0xff]  }
  0x2a   :  { %920 = vmatmul.mubr.msk.bf16.vlgmr.msra.gmra.mrb[0].mxu0 %vm90_vm1, %v999_v2  ;;  %317 = vmatprep.subr.bf16.mxu1 %v1004_v6  ;;  %v1012_v12 = vld [vmem:[#allocation2 + $0x4c] ss:$12 sps:$4 sm:$0xff]   ;;  %v1016_v15 = vld [vmem:[#allocation2 + $0x64] ss:$12 sps:$4 sm:$0xff]   ;;  %v1019_v17 = vld [vmem:[#allocation2 + $0x68] ss:$12 sps:$4 sm:$0xff]  }
  0x2b   :  { %924 = vmatpush3.bf16.msra.mxu0 %v1003_v5  ;;  %939 = vmatprep.mubr.msk.bf16.mxu0 %vm1145_vm0, %v1144_v0  ;;  %v1018_v16 = vld [vmem:[#allocation2 + $0x60] ss:$12 sps:$4 sm:$0xff]   ;;  %v1020_v18 = vld [vmem:[#allocation2 + $0x7c] ss:$12 sps:$4 sm:$0xff]   ;;  %v1022_v19 = vld [vmem:[#allocation2 + $0x78] ss:$12 sps:$4 sm:$0xff]  }
  0x2c   :  { %925 = vmatprep.subr.bf16.mxu0 %v1144_v0  ;;  %v1023_v20 = vld [vmem:[#allocation2 + $0x80] ss:$12 sps:$4 sm:$0xff]   ;;  %v1026_v22 = vld [vmem:[#allocation2 + $0x90] ss:$12 sps:$4 sm:$0xff]   ;;  %v1027_v23 = vld [vmem:[#allocation2 + $0x98] ss:$12 sps:$4 sm:$0xff]  }
  0x2d   :  { %318 = vmatpush1.bf16.msra.mxu1 %v1006_v7  ;;  %v1024_v21 = vld [vmem:[#allocation2 + $0x94] ss:$12 sps:$4 sm:$0xff]   ;;  %v1028_v24 = vld [vmem:[#allocation2 + $0xac] ss:$12 sps:$4 sm:$0xff]   ;;  %v1031_v26 = vld [vmem:[#allocation2 + $0xb0] ss:$12 sps:$4 sm:$0xff]  }
  0x2e   :  { %319 = vmatprep.subr.bf16.mxu1 %v1008_v9  ;;  %v1030_v25 = vld [vmem:[#allocation2 + $0xa8] ss:$12 sps:$4 sm:$0xff]   ;;  %v1034_v27 = vld [vmem:[#allocation4 + $0x4] ss:$12 sps:$4 sm:$0xff]   ;;  %v822_v29 = vld [vmem:[%s1335_s3] ss:$0 sm:$0xff] }
  0x2f   :  { %926 = vmatpush3.bf16.msra.mxu0 %v1007_v8  ;;  %v1032_v38 = vld [vmem:[#allocation4] ss:$12 sps:$4 sm:$0xff]   ;;  %v1053_v39 = vld [vmem:[#allocation4 + $0x8] ss:$12 sps:$4 sm:$0xff]   ;;  %v1035_v42 = vld [vmem:[#allocation4 + $0x18] ss:$12 sps:$4 sm:$0xff]  }
  0x30   :  { %927 = vmatprep.subr.bf16.mxu0 %v1144_v0  ;;  %v1037_v41 = vld [vmem:[#allocation4 + $0x1c] ss:$12 sps:$4 sm:$0xff]   ;;  %v1057_v43 = vld [vmem:[#allocation4 + $0x20] ss:$12 sps:$4 sm:$0xff]   ;;  %v1058_v46 = vld [vmem:[#allocation4 + $0x38] ss:$12 sps:$4 sm:$0xff]  }
  0x31   :  { %320 = vmatpush1.bf16.msra.mxu1 %v1010_v10  ;;  %v1040_v44 = vld [vmem:[#allocation4 + $0x34] ss:$12 sps:$4 sm:$0xff]   ;;  %v1038_v45 = vld [vmem:[#allocation4 + $0x30] ss:$12 sps:$4 sm:$0xff]   ;;  %v1043_v47 = vld [vmem:[#allocation4 + $0x4c] ss:$12 sps:$4 sm:$0xff]  }
  0x32   :  { %321 = vmatprep.subr.bf16.mxu1 %v1012_v12  ;;  %v1041_v48 = vld [vmem:[#allocation4 + $0x48] ss:$12 sps:$4 sm:$0xff]   ;;  %v1059_v49 = vld [vmem:[#allocation4 + $0x50] ss:$12 sps:$4 sm:$0xff]   ;;  %v1044_v51 = vld [vmem:[#allocation4 + $0x60] ss:$12 sps:$4 sm:$0xff]  }
  0x33   :  { %928 = vmatpush3.bf16.msra.mxu0 %v1011_v11  ;;  %v1046_v50 = vld [vmem:[#allocation4 + $0x64] ss:$12 sps:$4 sm:$0xff]   ;;  %v1060_v52 = vld [vmem:[#allocation4 + $0x68] ss:$12 sps:$4 sm:$0xff]   ;;  %v1061_v55 = vld [vmem:[#allocation4 + $0x80] ss:$12 sps:$4 sm:$0xff]  }
  0x34   :  { %929 = vmatprep.subr.bf16.mxu0 %v1144_v0  ;;  %v1049_v53 = vld [vmem:[#allocation4 + $0x7c] ss:$12 sps:$4 sm:$0xff]   ;;  %v1047_v54 = vld [vmem:[#allocation4 + $0x78] ss:$12 sps:$4 sm:$0xff]   ;;  %v1052_v56 = vld [vmem:[#allocation4 + $0x94] ss:$12 sps:$4 sm:$0xff]  }
  0x35   :  { %322 = vmatpush1.bf16.msra.mxu1 %v1014_v13  ;;  %v1050_v57 = vld [vmem:[#allocation4 + $0x90] ss:$12 sps:$4 sm:$0xff]   ;;  %v1062_v58 = vld [vmem:[#allocation4 + $0x98] ss:$12 sps:$4 sm:$0xff]   ;;  %v1054_v60 = vld [vmem:[#allocation4 + $0xa8] ss:$12 sps:$4 sm:$0xff]  }
  0x36   :  { %323 = vmatprep.subr.bf16.mxu1 %v1016_v15  ;;  %v1056_v59 = vld [vmem:[#allocation4 + $0xac] ss:$12 sps:$4 sm:$0xff]   ;;  %v1265_v61 = vld [vmem:[%s1333_s1] sm:$0xff]  ;;  %v1063_v63 = vld [vmem:[#allocation4 + $0xb0] ss:$12 sps:$4 sm:$0xff]  }
  0x37   :  { %930 = vmatpush3.bf16.msra.mxu0 %v1015_v14  ;;  %v1270_v62 = vld [vmem:[%s1333_s1 + $0x8] sm:$0xff]  ;;  %v1064_v2 = vld [vmem:[%s1340_s8] sm:$0xff]   ;;  %v1066_v4 = vld [vmem:[%s1340_s8 + $0x10] sm:$0xff]   ;;  %v172_v14 = vlaneseq }
  0x38   :  { %931 = vmatprep.subr.bf16.mxu0 %v1144_v0  ;;  %v399_v1 = vpack.c.bf16 %v1270_v62, %v1265_v61  ;;  %v1065_v3 = vld [vmem:[%s1340_s8 + $0x8] sm:$0xff]   ;;  %v1067_v5 = vld [vmem:[%s1340_s8 + $0x18] sm:$0xff]   ;;  %v1068_v6 = vld [vmem:[%s1340_s8 + $0x20] sm:$0xff]  }
  0x39   :  { %324 = vmatpush1.bf16.msra.mxu1 %v1018_v16  ;;  %v1069_v7 = vld [vmem:[%s1340_s8 + $0x28] sm:$0xff]   ;;  %v1070_v8 = vld [vmem:[%s1340_s8 + $0x30] sm:$0xff]   ;;  %v1071_v9 = vld [vmem:[%s1340_s8 + $0x38] sm:$0xff]   ;;  %v173_v15 = vshrl.u32 %v172_v14, 7 }
  0x3a   :  { %325 = vmatprep.subr.bf16.mxu1 %v1020_v18 }
  0x3b   :  { %932 = vmatpush3.bf16.msra.mxu0 %v1019_v17  ;;  %v174_v16 = vsub.s32 0, %v173_v15  ;;  %v170_v17 = vld [vmem:[%s1338_s6] sm:$0x7]  ;;  %v178_v18 = vsub.s32 1, %v173_v15 }
  0x3c   :  { %933 = vmatprep.subr.bf16.mxu0 %v1144_v0 }
  0x3d   :  { %326 = vmatpush1.bf16.msra.mxu1 %v1022_v19  ;;  %v175_v19 = vrot.slane %v170_v17, %v174_v16 }
  0x3e   :  { %327 = vmatprep.subr.bf16.mxu1 %v1024_v21  ;;  %v179_v21 = vrot.slane %v170_v17, %v178_v18 }
  0x3f   :  { %934 = vmatpush3.bf16.msra.mxu0 %v1023_v20 }
  0x40   :  { %935 = vmatprep.subr.bf16.mxu0 %v1144_v0 }
  0x41   :  { %328 = vmatpush1.bf16.msra.mxu1 %v1026_v22 }
  0x42   :  { %329 = vmatprep.subr.bf16.mxu1 %v1028_v24 }
  0x43   :  { %936 = vmatpush3.bf16.msra.mxu0 %v1027_v23 }
  0x44   :  { %937 = vmatprep.subr.bf16.mxu0 %v1144_v0 }
  0x45   :  { %330 = vmatpush1.bf16.msra.mxu1 %v1030_v25 }
  0x46   :  { %560 = vmatprep.subr.bf16.mxu1 %v1034_v27 }
  0x47   :  { %938 = vmatpush3.bf16.msra.mxu0 %v1031_v26 }
  0x48   :  { %943 = vmatprep.subr.bf16.mxu0 %v1144_v0 }
  0xfd   :  { %v128_v30 = vpop.f32.mrb[0].mxu0 }
  0xfe   :  { %v129_v31 = vadd.f32 %v822_v29, %v128_v30  ;;  %v921_v32 = vpop.f32.mrb[1].mxu0 }
  0xff   :  { %v131_v33 = vpop.f32.mrb[2].mxu0 }
 0x100   :  { %v132_v34 = vadd.f32 %v822_v29, %v131_v33  ;;  %v922_v35 = vpop.f32.mrb[3].mxu0  ;;  %v135_v36 = vmax.f32 %v129_v31, 0.0 }
 0x102   :  { %v136_v37 = vmax.f32 %v132_v34, 0.0 }
 0x104   :  { %v137_v40 = vpack.c.bf16 %v136_v37, %v135_v36 }
 0x106   :  { %348 = vmatmul.mubr.bf16.vlgmr.msra.gmra.mrb[0].mxu1 %v137_v40  ;;  %940 = vmatmul.mubr.bf16.vlgmr.msra.gmra.mrb[4].mxu0 %v137_v40  ;;  %v182_v40 = vsub.s32 2, %v173_v15 }
 0x107   :  { %561 = vmatpush1.bf16.msra.mxu1 %v1032_v38  ;;  %944 = vmatpush3.bf16.msra.mxu0 %v1053_v39 }
 0x108   :  { %562 = vmatprep.subr.bf16.mxu1 %v1037_v41  ;;  %945 = vmatprep.subr.bf16.mxu0 %v1144_v0 }
 0x109   :  { %592 = vmatprep.mubr.bf16.mxu1 %v1146_v28  ;;  %959 = vmatprep.mubr.msk.bf16.mxu0 %vm1145_vm0, %v1144_v0 }
 0x10b   :  { %563 = vmatpush1.bf16.msra.mxu1 %v1035_v42  ;;  %946 = vmatpush3.bf16.msra.mxu0 %v1057_v43  ;;  %v878_v42 = vld [vmem:[%s1339_s7] ss:$0 sm:$0xff] }
 0x10c   :  { %564 = vmatprep.subr.bf16.mxu1 %v1040_v44  ;;  %947 = vmatprep.subr.bf16.mxu0 %v1144_v0  ;;  %v183_v44 = vrot.slane %v170_v17, %v182_v40 }
 0x10f   :  { %565 = vmatpush1.bf16.msra.mxu1 %v1038_v45  ;;  %948 = vmatpush3.bf16.msra.mxu0 %v1058_v46 }
 0x110   :  { %566 = vmatprep.subr.bf16.mxu1 %v1043_v47  ;;  %949 = vmatprep.subr.bf16.mxu0 %v1144_v0 }
 0x113   :  { %567 = vmatpush1.bf16.msra.mxu1 %v1041_v48  ;;  %950 = vmatpush3.bf16.msra.mxu0 %v1059_v49 }
 0x114   :  { %568 = vmatprep.subr.bf16.mxu1 %v1046_v50  ;;  %951 = vmatprep.subr.bf16.mxu0 %v1144_v0 }
 0x117   :  { %569 = vmatpush1.bf16.msra.mxu1 %v1044_v51  ;;  %952 = vmatpush3.bf16.msra.mxu0 %v1060_v52 }
 0x118   :  { %570 = vmatprep.subr.bf16.mxu1 %v1049_v53  ;;  %953 = vmatprep.subr.bf16.mxu0 %v1144_v0 }
 0x11b   :  { %571 = vmatpush1.bf16.msra.mxu1 %v1047_v54  ;;  %954 = vmatpush3.bf16.msra.mxu0 %v1061_v55 }
 0x11c   :  { %572 = vmatprep.subr.bf16.mxu1 %v1052_v56  ;;  %955 = vmatprep.subr.bf16.mxu0 %v1144_v0 }
 0x11f   :  { %573 = vmatpush1.bf16.msra.mxu1 %v1050_v57  ;;  %956 = vmatpush3.bf16.msra.mxu0 %v1062_v58 }
 0x120   :  { %574 = vmatprep.subr.bf16.mxu1 %v1056_v59  ;;  %957 = vmatprep.subr.bf16.mxu0 %v1144_v0 }
 0x123   :  { %575 = vmatpush1.bf16.msra.mxu1 %v1054_v60  ;;  %958 = vmatpush3.bf16.msra.mxu0 %v1063_v63 }
 0x124   :  { %963 = vmatprep.subr.bf16.mxu1 %v1144_v0 }
 0x126   :  { %593 = vmatmul.mubr.bf16.vlgmr.msra.gmra.mrb[0].mxu1 %v399_v1  ;;  %960 = vmatmul.mubr.bf16.vlgmr.msra.gmra.mrb[8].mxu0 %v399_v1 }
 0x127   :  { %979 = vmatprep.mubr.msk.bf16.mxu1 %vm1145_vm0, %v1144_v0  ;;  %964 = vmatpush3.bf16.msra.mxu1 %v1064_v2 }
 0x128   :  { %965 = vmatprep.subr.bf16.mxu1 %v1144_v0 }
 0x12b   :  { %966 = vmatpush3.bf16.msra.mxu1 %v1065_v3 }
 0x12c   :  { %967 = vmatprep.subr.bf16.mxu1 %v1144_v0 }
 0x12f   :  { %968 = vmatpush3.bf16.msra.mxu1 %v1066_v4 }
 0x130   :  { %969 = vmatprep.subr.bf16.mxu1 %v1144_v0 }
 0x133   :  { %970 = vmatpush3.bf16.msra.mxu1 %v1067_v5 }
 0x134   :  { %971 = vmatprep.subr.bf16.mxu1 %v1144_v0 }
 0x137   :  { %972 = vmatpush3.bf16.msra.mxu1 %v1068_v6 }
 0x138   :  { %973 = vmatprep.subr.bf16.mxu1 %v1144_v0 }
 0x13b   :  { %974 = vmatpush3.bf16.msra.mxu1 %v1069_v7 }
 0x13c   :  { %975 = vmatprep.subr.bf16.mxu1 %v1144_v0 }
 0x13f   :  { %976 = vmatpush3.bf16.msra.mxu1 %v1070_v8 }
 0x140   :  { %977 = vmatprep.subr.bf16.mxu1 %v1144_v0 }
 0x143   :  { %978 = vmatpush3.bf16.msra.mxu1 %v1071_v9 }
 0x1d9   :  { %v392_v10 = vpop.f32.mrb[4].mxu0 }
 0x1da   :  { %v941_v11 = vpop.f32.mrb[5].mxu0  ;;  %v393_v49 = vadd.f32 %v392_v10, %v183_v44 }
 0x1db   :  { %v395_v12 = vpop.f32.mrb[6].mxu0 }
 0x1dc   :  { %v942_v13 = vpop.f32.mrb[7].mxu0  ;;  %v396_v53 = vadd.f32 %v395_v12, %v183_v44 }
 0x1f9   :  { %v594_v20 = vpop.f32.mrb[0].mxu1  ;;  %v637_v22 = vpop.f32.mrb[8].mxu0 }
 0x1fa   :  { %v983_v23 = vadd.f32 %v594_v20, %v175_v19  ;;  %v596_v24 = vpop.f32.mrb[1].mxu1  ;;  %v961_v0 = vpop.f32.mrb[9].mxu0  ;;  %v679_v46 = vadd.f32 %v878_v42, %v637_v22 }
 0x1fb   :  { %v598_v25 = vpop.f32.mrb[2].mxu1  ;;  %v640_v26 = vpop.f32.mrb[10].mxu0  ;;  %v984_v31 = vadd.f32 %v596_v24, %v179_v21 }
 0x1fc   :  { %v874_v27 = vmul.f32 -1.442695, %v983_v23  ;;  %v985_v28 = vadd.f32 %v598_v25, %v175_v19  ;;  %v600_v29 = vpop.f32.mrb[3].mxu1  ;;  %v962_v30 = vpop.f32.mrb[11].mxu0  ;;  %v680_v51 = vadd.f32 %v878_v42, %v640_v26 }
 0x1fd   :  { %v986_v33 = vadd.f32 %v600_v29, %v179_v21  ;;  %v876_v34 = vmul.f32 -1.442695, %v984_v31 }
 0x1fe   :  { %1072 = vpow2.f32 %v874_v27  ;;  %v875_v32 = vmul.f32 -1.442695, %v985_v28 }
 0x1ff   :  { %v877_v35 = vmul.f32 -1.442695, %v986_v33 }
 0x200   :  { %1074 = vpow2.f32 %v875_v32 }
 0x201   :  { %1076 = vpow2.f32 %v876_v34 }
 0x202   :  { %1078 = vpow2.f32 %v877_v35 }
 0x208   :  { %v1073_v36 = vpop.eup %1072 }
 0x209   :  { %v652_v37 = vadd.f32 1.0, %v1073_v36 }
 0x20a   :  { %v1075_v38 = vpop.eup %1074 }
 0x20b   :  { %1080 = vrcp.f32 %v652_v37  ;;  %v653_v39 = vadd.f32 1.0, %v1075_v38  ;;  %v1077_v41 = vpop.eup %1076 }
 0x20c   :  { %v1079_v43 = vpop.eup %1078  ;;  %v666_v45 = vadd.f32 1.0, %v1077_v41 }
 0x20d   :  { %1082 = vrcp.f32 %v653_v39  ;;  %v667_v47 = vadd.f32 1.0, %v1079_v43 }
 0x20e   :  { %1084 = vrcp.f32 %v666_v45 }
 0x20f   :  { %1086 = vrcp.f32 %v667_v47 }
 0x215   :  { %v1081_v48 = vpop.eup %1080 }
 0x216   :  { %v681_v50 = vmul.f32 %v1081_v48, %v679_v46 }
 0x217   :  { %v1083_v52 = vpop.eup %1082 }
 0x218   :  { %v683_v54 = vadd.f32 %v681_v50, %v393_v49  ;;  %v682_v55 = vmul.f32 %v1083_v52, %v680_v51  ;;  %v1085_v57 = vpop.eup %1084 }
 0x219   :  { %v1087_v58 = vpop.eup %1086  ;;  %v687_v59 = vsub.f32 1.0, %v1085_v57  ;;  %v691_v2 = vmul.f32 %v1085_v57, %v1265_v61  ;;  %v879_v61 = vld [vmem:[%s1341_s9] ss:$0 sm:$0xff] }
 0x21a   :  { %1088 = vtanh.f32 %v683_v54  ;;  %v684_v56 = vadd.f32 %v682_v55, %v396_v53  ;;  %v688_v63 = vsub.f32 1.0, %v1087_v58  ;;  %v692_v5 = vmul.f32 %v1087_v58, %v1270_v62 }
 0x21c   :  { %1090 = vtanh.f32 %v684_v56 }
 0x224   :  { %v1089_v60 = vpop.eup %1088 }
 0x225   :  { %v689_v1 = vmul.f32 %v1089_v60, %v687_v59 }
 0x226   :  { %v1091_v3 = vpop.eup %1090 }
 0x227   :  { %v690_v4 = vmul.f32 %v1091_v3, %v688_v63  ;;  %v693_v6 = vadd.f32 %v691_v2, %v689_v1 }
 0x229   :  { %v694_v7 = vadd.f32 %v692_v5, %v690_v4  ;;  %810 = vst [vmem:[%s1343_s11] sm:$0xff] %v693_v6 }
 0x22b   :  { %v695_v8 = vpack.c.bf16 %v694_v7, %v693_v6  ;;  %811 = vst [vmem:[%s1343_s11 + $0x8] sm:$0xff] %v694_v7 }
 0x22d   :  { %980 = vmatmul.mubr.bf16.vlgmr.msra.gmra.mrb[4].mxu1 %v695_v8 }
 0x300   :  { %v801_v9 = vpop.f32.mrb[4].mxu1 }
 0x301   :  { %v802_v10 = vadd.f32 %v879_v61, %v801_v9  ;;  %v981_v11 = vpop.f32.mrb[5].mxu1 }
 0x302   :  { %v804_v62 = vpop.f32.mrb[6].mxu1 }
 0x303   :  { %808 = vst [vmem:[%s1342_s10] sm:$0xff] %v802_v10  ;;  %v805_v12 = vadd.f32 %v879_v61, %v804_v62  ;;  %v982_v13 = vpop.f32.mrb[7].mxu1 }
 0x305   :  { %809 = vst [vmem:[%s1342_s10 + $0x8] sm:$0xff] %v805_v12 }
 0x306   :  { %820 = vsyncpa [#allocation3], 1 }
 0x307   :  { %821 = vsyncpa [#allocation5], 1 }

</bundles_post_ra>
